<compile_context>
chip_gen: v5e
topology: v5e:2x2
jax: 0.10.0
libtpu: 0.0.40
codegen_flags: <defaults>
</compile_context>

<pallas_src>
import jax
import jax.numpy as jnp
from jax.experimental import pallas as pl
from jax.experimental.pallas import tpu as pltpu


def _conv_bn_kernel(xcol_ref, w_ref, scale_ref, shift_ref, o_ref):
    """One (batch, spatial-block) step: MXU matmul fused with BN scale/shift.

    xcol_ref : (CKK, S_BLK)    im2col'd input columns (lane axis = spatial)
    w_ref    : (C_out, CKK)    reshaped (masked) conv weight
    scale_ref: (C_out, 1)      folded BN scale = gamma / sqrt(var + eps)
    shift_ref: (C_out, 1)      folded BN shift = beta + (bias - mean) * scale
    o_ref    : (C_out, S_BLK)  lane-dense output block
    """
    acc = jnp.dot(w_ref[...], xcol_ref[...],
                  preferred_element_type=jnp.float32)
    o_ref[...] = (acc * scale_ref[...] + shift_ref[...]).astype(o_ref.dtype)


def _pick_spatial_block(hwo, max_lanes=2048):
    """Largest 128-multiple block (<= max_lanes) dividing Ho*Wo, else full."""
    if hwo % 128 != 0:
        return hwo              # full-extent block is always legal
    blk = min(hwo, max_lanes)
    blk -= blk % 128
    while hwo % blk != 0:
        blk -= 128
    return blk


def masked_conv2d_bn_forward(x, weight, mask, bias, gamma, beta,
                             running_mean, running_var, *,
                             stride=(1, 1), padding=(0, 0), dilation=(1, 1),
                             groups=1, eps=1e-5):
    """MaskedConv2d.forward: conv2d (+ optional bias) followed by BatchNorm2d."""
    if groups != 1:
        raise NotImplementedError("groups > 1 not supported")

    n, c_in, h, w = x.shape
    c_out, c_in_w, kh, kw = weight.shape
    assert c_in_w == c_in, (c_in_w, c_in)

    sh, sw = stride
    ph, pw = padding
    dh, dw = dilation
    kh_ext = (kh - 1) * dh + 1
    kw_ext = (kw - 1) * dw + 1
    ho = (h + 2 * ph - kh_ext) // sh + 1
    wo = (w + 2 * pw - kw_ext) // sw + 1
    hwo = ho * wo
    ckk = c_in * kh * kw

    # ---- layout prep in XLA: pad + strided-slice im2col (no FLOPs) --------
    w_eff = (weight * mask).astype(jnp.float32)
    w_mat = w_eff.reshape(c_out, ckk)                 # row order: (ci, kh, kw)

    xp = jnp.pad(x.astype(jnp.float32), ((0, 0), (0, 0), (ph, ph), (pw, pw)))
    cols = []
    for ikh in range(kh):
        for ikw in range(kw):
            h0, w0 = ikh * dh, ikw * dw
            patch = jax.lax.slice(
                xp,
                (0, 0, h0, w0),
                (n, c_in, h0 + (ho - 1) * sh + 1, w0 + (wo - 1) * sw + 1),
                (1, 1, sh, sw))                       # [N, C_in, Ho, Wo]
            cols.append(patch)
    xcol = jnp.stack(cols, axis=2)                    # [N, C_in, K*K, Ho, Wo]
    xcol = xcol.reshape(n, ckk, hwo)                  # lane axis = Ho*Wo

    # ---- fold BatchNorm (+ optional conv bias) into scale/shift -----------
    scale = (gamma / jnp.sqrt(running_var + eps)).astype(jnp.float32)
    b = jnp.zeros((c_out,), jnp.float32) if bias is None \
        else bias.astype(jnp.float32)
    shift = (beta + (b - running_mean) * scale).astype(jnp.float32)
    scale2 = scale.reshape(c_out, 1)
    shift2 = shift.reshape(c_out, 1)

    # ---- Pallas call -------------------------------------------------------
    s_blk = _pick_spatial_block(hwo)
    grid = (n, hwo // s_blk)

    cost = pl.CostEstimate(
        flops=2 * n * c_out * hwo * ckk,
        transcendentals=0,
        bytes_accessed=4 * (xcol.size + w_mat.size + scale2.size
                            + shift2.size + n * c_out * hwo),
    )

    out_flat = pl.pallas_call(
        _conv_bn_kernel,
        out_shape=jax.ShapeDtypeStruct((n, c_out, hwo), x.dtype),
        grid_spec=pltpu.PrefetchScalarGridSpec(
            num_scalar_prefetch=0,
            grid=grid,
            in_specs=[
                pl.BlockSpec((pl.Squeezed(), ckk, s_blk),
                             lambda b, s: (b, 0, s)),
                pl.BlockSpec((c_out, ckk), lambda b, s: (0, 0)),
                pl.BlockSpec((c_out, 1), lambda b, s: (0, 0)),
                pl.BlockSpec((c_out, 1), lambda b, s: (0, 0)),
            ],
            out_specs=pl.BlockSpec((pl.Squeezed(), c_out, s_blk),
                                   lambda b, s: (b, 0, s)),
        ),
        compiler_params=pltpu.CompilerParams(
            dimension_semantics=("parallel", "parallel")),
        cost_estimate=cost,
    )(xcol, w_mat, scale2, shift2)

    return out_flat.reshape(n, c_out, ho, wo)


def reference_conv_bn(x, weight, mask, bias, gamma, beta, running_mean,
                      running_var, *, stride, padding, dilation, eps):
    """Pure-JAX reference: conv2d + inference BatchNorm."""
    w_eff = weight * mask
    y = jax.lax.conv_general_dilated(
        x, w_eff, window_strides=stride,
        padding=[(padding[0], padding[0]), (padding[1], padding[1])],
        rhs_dilation=dilation,
        dimension_numbers=("NCHW", "OIHW", "NCHW"))
    if bias is not None:
        y = y + bias[None, :, None, None]
    inv = gamma / jnp.sqrt(running_var + eps)
    return ((y - running_mean[None, :, None, None]) * inv[None, :, None, None]
            + beta[None, :, None, None])


if __name__ == "__main__":
    key = jax.random.PRNGKey(0)
    k1, k2, k3, k4, k5, k6 = jax.random.split(key, 6)

    N, C_IN, C_OUT, H, W, K = 2, 4, 8, 16, 16, 3
    STRIDE, PADDING, DILATION = (1, 1), (1, 1), (1, 1)
    EPS = 1e-5

    x = jax.random.normal(k1, (N, C_IN, H, W), dtype=jnp.float32)
    weight = jax.random.normal(k2, (C_OUT, C_IN, K, K), dtype=jnp.float32) * 0.1
    mask = jnp.ones((C_OUT, C_IN, K, K), dtype=jnp.float32)  # all ones at init
    gamma = 1.0 + 0.1 * jax.random.normal(k3, (C_OUT,), dtype=jnp.float32)
    beta = 0.1 * jax.random.normal(k4, (C_OUT,), dtype=jnp.float32)
    running_mean = 0.1 * jax.random.normal(k5, (C_OUT,), dtype=jnp.float32)
    running_var = jax.random.uniform(k6, (C_OUT,), dtype=jnp.float32,
                                     minval=0.5, maxval=1.5)
    bias = None  # module default: bias=False

    out = masked_conv2d_bn_forward(
        x, weight, mask, bias, gamma, beta, running_mean, running_var,
        stride=STRIDE, padding=PADDING, dilation=DILATION, eps=EPS)
    out = jax.block_until_ready(out)

    ref = reference_conv_bn(
        x, weight, mask, bias, gamma, beta, running_mean, running_var,
        stride=STRIDE, padding=PADDING, dilation=DILATION, eps=EPS)

    assert out.shape == (N, C_OUT, H, W), out.shape
    assert jnp.allclose(out, ref, atol=1e-4, rtol=1e-4), \
        float(jnp.max(jnp.abs(out - ref)))

    print("KERNEL_OK")
</pallas_src>

<mosaic_0001>
module attributes {stable_mosaic.version = 11 : i64} {
  func.func @_conv_bn_kernel(%arg0: i32, %arg1: i32, %arg2: memref<1x36x256xf32, #tpu.memory_space<vmem>>, %arg3: memref<8x36xf32, #tpu.memory_space<vmem>>, %arg4: memref<8x1xf32, #tpu.memory_space<vmem>>, %arg5: memref<8x1xf32, #tpu.memory_space<vmem>>, %arg6: memref<1x8x256xf32, #tpu.memory_space<vmem>>) attributes {dimension_semantics = [#tpu.dimension_semantics<parallel>, #tpu.dimension_semantics<parallel>], iteration_bounds = array<i64: 2, 1>, scalar_prefetch = 0 : i64, scratch_operands = 0 : i64, tpu.core_type = #tpu.core_type<tc>, window_params = [{transform_indices = @transform_0, window_bounds = array<i64: 1, 36, 256>}, {pipeline_mode = #tpu.pipeline_mode<synchronous>, transform_indices = @transform_1, window_bounds = array<i64: 8, 36>}, {pipeline_mode = #tpu.pipeline_mode<synchronous>, transform_indices = @transform_2, window_bounds = array<i64: 8, 1>}, {pipeline_mode = #tpu.pipeline_mode<synchronous>, transform_indices = @transform_3, window_bounds = array<i64: 8, 1>}, {transform_indices = @transform_4, window_bounds = array<i64: 1, 8, 256>}]} {
    %c0 = arith.constant 0 : index
    %c0_0 = arith.constant 0 : index
    %0 = vector.load %arg3[%c0, %c0_0] : memref<8x36xf32, #tpu.memory_space<vmem>>, vector<8x36xf32>
    %c0_1 = arith.constant 0 : index
    %c0_2 = arith.constant 0 : index
    %c0_3 = arith.constant 0 : index
    %1 = vector.load %arg2[%c0_1, %c0_2, %c0_3] : memref<1x36x256xf32, #tpu.memory_space<vmem>>, vector<1x36x256xf32>
    %2 = vector.shape_cast %1 : vector<1x36x256xf32> to vector<36x256xf32>
    %cst = arith.constant dense<0.000000e+00> : vector<8x256xf32>
    %3 = tpu.matmul %0, %2, %cst {dimension_numbers = #tpu.dot_dimension_numbers<[1], [0], [0], [1], [0, 0, 1, 1], [], []>} : vector<8x36xf32>, vector<36x256xf32>, vector<8x256xf32> -> vector<8x256xf32>
    %c0_4 = arith.constant 0 : index
    %c0_5 = arith.constant 0 : index
    %4 = vector.load %arg4[%c0_4, %c0_5] : memref<8x1xf32, #tpu.memory_space<vmem>>, vector<8x1xf32>
    %5 = vector.broadcast %4 : vector<8x1xf32> to vector<8x256xf32>
    %6 = arith.mulf %3, %5 : vector<8x256xf32>
    %c0_6 = arith.constant 0 : index
    %c0_7 = arith.constant 0 : index
    %7 = vector.load %arg5[%c0_6, %c0_7] : memref<8x1xf32, #tpu.memory_space<vmem>>, vector<8x1xf32>
    %8 = vector.broadcast %7 : vector<8x1xf32> to vector<8x256xf32>
    %9 = arith.addf %6, %8 : vector<8x256xf32>
    %c0_8 = arith.constant 0 : index
    %c0_9 = arith.constant 0 : index
    %c0_10 = arith.constant 0 : index
    %10 = vector.load %arg6[%c0_8, %c0_9, %c0_10] : memref<1x8x256xf32, #tpu.memory_space<vmem>>, vector<1x8x256xf32>
    %11 = vector.shape_cast %10 : vector<1x8x256xf32> to vector<8x256xf32>
    %12 = vector.shape_cast %9 : vector<8x256xf32> to vector<1x8x256xf32>
    tpu.vector_store %arg6[%c0_8, %c0_9, %c0_10], %12 {strides = array<i32>} : memref<1x8x256xf32, #tpu.memory_space<vmem>>, vector<1x8x256xf32>,
    return
  }
  func.func @transform_0(%arg0: i32, %arg1: i32) -> (i32, i32, i32) {
    %c0_i32 = arith.constant 0 : i32
    %c0_i32_0 = arith.constant 0 : i32
    return %arg0, %c0_i32, %arg1 : i32, i32, i32
  }
  func.func @transform_1(%arg0: i32, %arg1: i32) -> (i32, i32) {
    %c0_i32 = arith.constant 0 : i32
    %c0_i32_0 = arith.constant 0 : i32
    %c0_i32_1 = arith.constant 0 : i32
    return %c0_i32, %c0_i32_0 : i32, i32
  }
  func.func @transform_2(%arg0: i32, %arg1: i32) -> (i32, i32) {
    %c0_i32 = arith.constant 0 : i32
    %c0_i32_0 = arith.constant 0 : i32
    %c0_i32_1 = arith.constant 0 : i32
    return %c0_i32, %c0_i32_0 : i32, i32
  }
  func.func @transform_3(%arg0: i32, %arg1: i32) -> (i32, i32) {
    %c0_i32 = arith.constant 0 : i32
    %c0_i32_0 = arith.constant 0 : i32
    %c0_i32_1 = arith.constant 0 : i32
    return %c0_i32, %c0_i32_0 : i32, i32
  }
  func.func @transform_4(%arg0: i32, %arg1: i32) -> (i32, i32, i32) {
    %c0_i32 = arith.constant 0 : i32
    %c0_i32_0 = arith.constant 0 : i32
    return %arg0, %c0_i32, %arg1 : i32, i32, i32
  }
}

</mosaic_0001>

<bundles_post_ra>
// kernel: tpu_custom_call.1
= control target key start
LH: loop header
LB: loop body
LE: loop exit
PB: predicated region body
PF: predicated region fallthrough
CT: control target
= control target key end

     0   :  { %9 = vsyncpa [#allocation3], 0  ;;  %s689_s0 = inlined_call_operand.vmem [shape: f32[2,36,256], index: 0, kind: input, shape index: {}]   ;;  %s690_s1 = inlined_call_operand.vmem [shape: f32[8,36], index: 1, kind: input, shape index: {}]   ;;  %s691_s2 = inlined_call_operand.vmem [shape: f32[8,1], index: 2, kind: input, shape index: {}]   ;;  %s692_s3 = inlined_call_operand.vmem [shape: f32[8,1], index: 3, kind: input, shape index: {}]   ;;  %s693_s4 = inlined_call_operand.hbm [shape: f32[2,8,256], index: 4, kind: output, shape index: {}]  }
   0x1   :  { %11 = vsyncpa [#allocation3 + $0x1], 0  ;;  %s583_s15 = smov 0   ;;  %s585_s16 = smov 0  }
   0x2   :  { %s587_s17 = smov 0   ;;  %s589_s18 = smov 0  }
   0x3   :  { %s591_s19 = smov 0   ;;  %s593_s20 = smov 0  }
   0x4 LB: > { %s402_s21 = sadd.s32 4294967295, %s555_s20   ;;  %s403_s22 = sadd.s32 4294967294, %s555_s20   ;;  %s555_s20 = sphi %s593_s20, %s17_s20   ;;  %s551_s19 = sphi %s591_s19, %s700_s19   ;;  %s547_s18 = sphi %s589_s18, %s699_s18   ;;  %s543_s17 = sphi %s587_s17, %s698_s17   ;;  %s539_s16 = sphi %s585_s16, %s697_s16   ;;  %s535_s15 = sphi %s583_s15, %s696_s15  }
   0x5   : > { %s29_s23 = sadd.s32 1, %s551_s19  ;;  %s129_s24 = sadd.s32 1, %s543_s17 }
   0x6   : > { %p31_p0 = scmp.ge.s32.totalorder %s29_s23, 2  ;;  %p139_p1 = scmp.ne.s32.totalorder %s543_s17, %s539_s16 }
   0x7   : > { %p140_p2 = scmp.eq.s32.totalorder %s402_s21, 1  ;;  %p145_p3 = scmp.ne.s32.totalorder %s539_s16, %s535_s15 }
   0x8   : > { %s702_s23 = smov (%p31_p0, %s29_s23), 0  ;;  %p146_p5 = scmp.eq.s32.totalorder %s403_s22, 1 }
   0x9   : > { %p623_p4 = por %p140_p2, %p139_p1  ;;  %s124_s26 = ssub.s32 %s551_s19, %s702_s23 }
   0xa   : > { %p406_p6 = scmp.ge.s32.totalorder %s555_s20, 1  ;;  %p127_p7 = scmp.eq.s32.totalorder %s124_s26, 0 }
   0xb   : > { %p630_p8 = por %p146_p5, %p145_p3  ;;  %p186_p9 = scmp.lt.s32.totalorder %s555_s20, 3 }
   0xc   : > { %s636_s28 = scalar_select %p127_p7, %s543_s17, %s129_s24  }
   0xd   : > { %p187_p10 = pnand %p406_p6, %p186_p9 }
   0xe   : > { %p217_p11 = scmp.lt.s32.totalorder (!%p187_p10), %s547_s18, 1  ;;  %s213_s14 = sand.u32 (!%p187_p10), 1, %s539_s16  }
   0xf   : > { %190 = sbr.rel (%p187_p10) target bundleno = 169 (0xa9), region = 36  ;;  %s407_s21 = sshll.u32 (!%p187_p10), %s213_s14, 4 }
  0x10   : > { %s418_s22 = sshll.u32 (!%p187_p10), %s547_s18, 4  ;;  %s215_s30 = scalar_lea.vmem (!%p187_p10), [#allocation2], %s407_s21 }
  0x11   : > { %s321_s29 = scalar_lea.hbm (!%p187_p10), %s693_s4, %s418_s22  ;;  %s497_s11 = scalar_lea.hbm (!%p187_p10), %s693_s4, 32 }
  0x14   : > { %v289_v0 = vld [vmem:[%s691_s2] sm:$0xff]  ;;  %v557_v1 = vmov 0   ;;  %s218_s5 = scalar_select %p217_p11, %s547_s18, 1  ;;  %vm242_vm0 = vcmask 1043456   ;;  %vm238_vm1 = vcmask 293888  }
  0x15   : > { %476 = vset.pattern.permute.xlu0 %v557_v1  ;;  %v297_v6 = vld [vmem:[%s692_s3] sm:$0xff]  ;;  %s308_s18 = scalar_lea.sflag [#allocation3], %s213_s14 }
  0x16   : > { %292 = vperm.xlu0 %476, %v289_v0   ;;  %s419_s6 = smul.u32 80, %s218_s5  ;;  %v227_v13 = vld [vmem:[%s690_s1] sm:$0xff]  ;;  %s323_s5 = sshll.u32 %s215_s30, 4  ;;  %s324_s5 = int_to_ptr.vmem [resolvable:$true] %s323_s5 }
  0x18   : > { %s224_s9 = scalar_lea.vmem %s689_s0, %s419_s6  ;;  %s325_s6 = sshll.u32 %s321_s29, 4  ;;  %s326_s6 = int_to_ptr.hbm [resolvable:$true] %s325_s6 }
  0x19   : > { %v236_v2 = vld [vmem:[%s224_s9 + $0x40] sm:$0xf]  ;;  %v237_v3 = vld [vmem:[%s224_s9 + $0x48] sm:$0xf]  ;;  %v234_v4 = vld [vmem:[%s224_s9 + $0x30] sm:$0xff]  ;;  %s491_s7 = sshra.s32 %s326_s6, 4  ;;  %s492_s7 = int_to_ptr.hbm [resolvable:$true] %s491_s7 }
  0x1a   : > { %409 = vmatpush.msk.msra.mxu0 %vm242_vm0, %v236_v2  ;;  %411 = vmatpush.msk.msra.mxu1 %vm242_vm0, %v237_v3  ;;  %v235_v5 = vld [vmem:[%s224_s9 + $0x38] sm:$0xff]  ;;  %v232_v7 = vld [vmem:[%s224_s9 + $0x20] sm:$0xff]  ;;  %v233_v8 = vld [vmem:[%s224_s9 + $0x28] sm:$0xff]  ;;  %s493_s8 = scalar_lea.hbm %s492_s7, 16  ;;  %p498_p1 = scmp.lt.s32.totalorder %s492_s7, %s693_s4 }
  0x1b   : > { %v230_v9 = vld [vmem:[%s224_s9 + $0x10] sm:$0xff]  ;;  %v231_v10 = vld [vmem:[%s224_s9 + $0x18] sm:$0xff]  ;;  %v228_v11 = vld [vmem:[%s224_s9] sm:$0xff]  ;;  %p494_p12 = scmp.ne.s32.totalorder %s492_s7, %s493_s8  ;;  %p499_p2 = scmp.lt.s32.totalorder %s497_s11, %s493_s8 }
  0x1c   : > { %261 = vmatpush.msra.mxu0 %v234_v4  ;;  %281 = vmatpush.msra.mxu1 %v235_v5  ;;  %v229_v12 = vld [vmem:[%s224_s9 + $0x8] sm:$0xff] }
  0x1d   : > { %p495_p13 = pnand %p494_p12, %p623_p4  ;;  %p500_p3 = por %p499_p2, %p498_p1 }
  0x1e   : > { %300 = vperm.xlu0 %476, %v297_v6   ;;  %262 = vmatpush.msra.mxu0 %v232_v7 }
  0x1f   : > { %282 = vmatpush.msra.mxu1 %v233_v8  ;;  %p496_p0 = pneg %p495_p13 }
  0x20   : > { %263 = vmatpush.msra.mxu0 %v230_v9 }
  0x21   : > { %283 = vmatpush.msra.mxu1 %v231_v10  ;;  %p501_p5 = pnand %p500_p3, %p496_p0 }
  0x22   : > { %264 = vmatpush.msra.mxu0 %v228_v11 }
  0x23   : > { %284 = vmatpush.msra.mxu1 %v229_v12  ;;  %410 = vmatmul.msk.f32.vlgmr.msra.gmra.mxu0 %vm238_vm1, %v227_v13 }
  0x24   : > { %412 = vmatmul.msk.f32.vlgmr.msra.gmra.mxu1 %vm238_vm1, %v227_v13 }
  0x88   : > { %v293_v14 = vpop.permute.xlu0 %292 }
  0x90   : > { %v301_v19 = vpop.permute.xlu0 %300 }
  0xa0   : > { %v266_v15 = vpop.f32.mrf.mxu0 }
  0xa1   : > { %v286_v16 = vpop.f32.mrf.mxu1  ;;  %v295_v17 = vmul.f32 %v293_v14, %v266_v15 }
  0xa2   : > { %v296_v18 = vmul.f32 %v293_v14, %v286_v16 }
  0xa3   : > { %v303_v20 = vadd.f32 %v301_v19, %v295_v17 }
  0xa4   : > { %v304_v21 = vadd.f32 %v301_v19, %v296_v18 }
  0xa5   : > { %305 = vst [vmem:[%s215_s30] sm:$0xff] %v303_v20 }
  0xa6   : > { %306 = vst [vmem:[%s215_s30 + $0x8] sm:$0xff] %v304_v21 }
  0xa7   : > { %504 = shalt.err (!%p501_p5)
}
  0xa8   : > { %420 = dma.vmem_to_hbm [thread:$0]  (%p623_p4), %s324_s5, 256, %s326_s6, %s308_s18  }
  0xa9 PF: > { %p426_p6 = scmp.ge.s32.totalorder %s555_s20, 2  ;;  %s337_s14 = sand.u32 1, %s535_s15  }
  0xaa   : > { %s338_s21 = scalar_lea.sflag [#allocation3], %s337_s14 }
  0xab   : > { %p423_p7 = pnand %p426_p6, %p630_p8 }
  0xad   : > { %p424_p9 = pneg %p423_p7 }
  0xaf   : > { %530 = dma.done.wait (%p424_p9), %s338_s21, 256  }
  0xb0   : > { %532 = vsyncadd (%p424_p9), %s338_s21, 4294967040  ;;  %s17_s20 = sadd.s32 1, %s555_s20   ;;  %s696_s15 = smov %s539_s16 }
  0xb1   : > { %p14_p10 = scmp.ge.s32.totalorder %s17_s20, 4   ;;  %s697_s16 = smov %s543_s17 }
  0xb2   : > { %s698_s17 = smov %s636_s28  ;;  %s699_s18 = smov %s551_s19 }
  0xb3   : > { %s700_s19 = smov %s702_s23  ;;  %16 = sbr.rel (!%p14_p10) target bundleno = 4 (0x4), region = 71 }
  0xb8   :  { %344 = vsyncpa [#allocation3], 1 }
  0xb9   :  { %346 = vsyncpa [#allocation3 + $0x1], 1 }

</bundles_post_ra>
